<compile_context>
chip_gen: v7x
topology: tpu7x:2x2x1
jax: 0.10.0
libtpu: 0.0.40
codegen_flags: <defaults>
</compile_context>

<pallas_src>
import functools

import jax
import jax.numpy as jnp
from jax.experimental import pallas as pl
from jax.experimental.pallas import tpu as pltpu


# ----------------------------- Pallas kernel --------------------------------

def _dice_stats_kernel(p_ref, y_ref, w_ref, tp_ref, yw_ref, pw_ref, *,
                       hw: int, tile: int, apply_softmax: bool):
    t = pl.program_id(1)

    @pl.when(t == 0)
    def _():
        tp_ref[...] = jnp.zeros_like(tp_ref)
        yw_ref[...] = jnp.zeros_like(yw_ref)
        pw_ref[...] = jnp.zeros_like(pw_ref)

    logits = p_ref[0].astype(jnp.float32)      # (C, TILE), channels on sublanes
    y = y_ref[0].astype(jnp.float32)           # (C, TILE)
    w = w_ref[0].astype(jnp.float32)           # (1, TILE)

    if hw % tile != 0:
        # Ragged last tile: zero out-of-range lanes in-kernel (no jnp.pad copy).
        lane = jax.lax.broadcasted_iota(jnp.int32, (1, tile), 1)
        valid = (t * tile + lane) < hw
        logits = jnp.where(valid, logits, 0.0)
        y = jnp.where(valid, y, 0.0)
        w = jnp.where(valid, w, 0.0)

    if apply_softmax:
        # Softmax over channels == cheap 4-wide sublane reduce; divide on EUP.
        m = jnp.max(logits, axis=0, keepdims=True)              # (1, TILE)
        e = jnp.exp(logits - m)
        p = e * pl.reciprocal(jnp.sum(e, axis=0, keepdims=True), approx=True)
    else:
        p = logits

    yw = y * w                                  # (C, TILE)
    pw = p * w                                  # (C, TILE)
    tp = p * yw                                 # (C, TILE)

    tp_ref[0] += jnp.sum(tp, axis=1, keepdims=True)   # (C, 1)
    yw_ref[0] += jnp.sum(yw, axis=1, keepdims=True)
    pw_ref[0] += jnp.sum(pw, axis=1, keepdims=True)


def dice_stats_pallas(pred, soft_y, pix_w, *, apply_softmax=True,
                      max_tile=64 * 1024):
    """pred/soft_y: (N, C, HW); pix_w: (N, 1, HW).

    Returns per-image, per-class sums (tp, yw, pw), each of shape (N, C, 1),
    weighted only by the pixel weight (image weight is applied by the caller).
    """
    n, c, hw = pred.shape
    # One big lane-dense tile when it fits; otherwise 64K voxels per step
    # (multiple of 128).  VMEM budget stays a few MiB even with double
    # buffering -> safe on v5e/v6e (128 MiB) and v7x (64 MiB).
    tile = hw if hw <= max_tile else max_tile
    n_tiles = pl.cdiv(hw, tile)

    kernel = functools.partial(_dice_stats_kernel, hw=hw, tile=tile,
                               apply_softmax=apply_softmax)

    out_shape = tuple(jax.ShapeDtypeStruct((n, c, 1), jnp.float32)
                      for _ in range(3))
    out_specs = tuple(pl.BlockSpec((1, c, 1), lambda i, t: (i, 0, 0))
                      for _ in range(3))

    tp, yw, pw = pl.pallas_call(
        kernel,
        out_shape=out_shape,
        grid=(n, n_tiles),
        in_specs=[
            pl.BlockSpec((1, c, tile), lambda i, t: (i, 0, t)),
            pl.BlockSpec((1, c, tile), lambda i, t: (i, 0, t)),
            pl.BlockSpec((1, 1, tile), lambda i, t: (i, 0, t)),
        ],
        out_specs=out_specs,
        compiler_params=pltpu.CompilerParams(
            # Batch axis is independent (per-image accumulator rows) -> can be
            # split across TensorCores on v7x; HW axis is the reduction.
            dimension_semantics=("parallel", "arbitrary")),
    )(pred, soft_y, pix_w)
    return tp, yw, pw


# ------------------------------- JAX glue ------------------------------------

def _resize_coords(out_size, in_size):
    # PyTorch F.interpolate bilinear, align_corners=False.
    scale = in_size / out_size
    src = (jnp.arange(out_size, dtype=jnp.float32) + 0.5) * scale - 0.5
    src = jnp.maximum(src, 0.0)
    i0 = jnp.minimum(jnp.floor(src).astype(jnp.int32), in_size - 1)
    i1 = jnp.minimum(i0 + 1, in_size - 1)
    frac = src - i0.astype(jnp.float32)
    return i0, i1, frac


def bilinear_resize_nchw(x, out_h, out_w):
    n, c, h, w = x.shape
    if (out_h, out_w) == (h, w):
        return x
    i0, i1, fh = _resize_coords(out_h, h)
    j0, j1, fw = _resize_coords(out_w, w)
    top = x[:, :, i0, :]
    bot = x[:, :, i1, :]
    fh = fh[None, None, :, None]
    rows = top * (1.0 - fh) + bot * fh
    left = rows[:, :, :, j0]
    right = rows[:, :, :, j1]
    fw = fw[None, None, None, :]
    return left * (1.0 - fw) + right * fw


def dice_loss(prediction, soft_y, img_w, pix_w, cls_w, softmax):
    """Single-scale DiceLoss.forward (NCHW tensors)."""
    n, c, h, w = prediction.shape
    hw = h * w
    # Channel-major reshape: (N, C, H, W) -> (N, C, HW); no transpose needed.
    pred_3d = prediction.reshape(n, c, hw)
    soft_y_3d = soft_y.reshape(n, c, hw)
    pix_w_3d = pix_w.reshape(n, 1, hw)

    tp_n, yw_n, pw_n = dice_stats_pallas(pred_3d, soft_y_3d, pix_w_3d,
                                         apply_softmax=softmax)   # (N, C, 1)

    # Apply the per-image weight in the epilogue (sums are linear in w), then
    # reduce over the batch.
    iw = img_w[:, None, None].astype(jnp.float32)
    tp = jnp.sum(tp_n * iw, axis=(0, 2))     # (C,)
    yw = jnp.sum(yw_n * iw, axis=(0, 2))
    pw = jnp.sum(pw_n * iw, axis=(0, 2))

    eps = 1e-10
    # fn = yw - tp, fp = pw - tp  =>  2tp + fn + fp = yw + pw
    dice = (2.0 * tp + eps) / (yw + pw + eps)
    weighted_dice = dice * cls_w
    average_dice = weighted_dice.sum() / cls_w.sum()
    return 1.0 - average_dice


def multi_scale_dice_loss(predictions, soft_y, img_w, pix_w, cls_w, *,
                          softmax, scale_weights):
    """MultiScaleDiceLoss.forward (prediction is a list of NCHW tensors)."""
    assert len(predictions) == len(scale_weights)
    loss = 0.0
    weight = 0.0
    for pred, sw in zip(predictions, scale_weights):
        out_h, out_w = pred.shape[2], pred.shape[3]
        soft_y_t = bilinear_resize_nchw(soft_y, out_h, out_w)
        pix_w_t = bilinear_resize_nchw(pix_w, out_h, out_w)
        loss = loss + dice_loss(pred, soft_y_t, img_w, pix_w_t, cls_w,
                                softmax) * sw
        weight = weight + sw
    return loss / weight


# ------------------------- pure-JAX reference (check) ------------------------

def _dice_loss_ref(prediction, soft_y, img_w, pix_w, cls_w, softmax):
    if softmax:
        prediction = jax.nn.softmax(prediction, axis=1)
    c = prediction.shape[1]
    p2 = jnp.transpose(prediction, (0, 2, 3, 1)).reshape(-1, c)
    y2 = jnp.transpose(soft_y, (0, 2, 3, 1)).reshape(-1, c)
    w_full = pix_w * img_w[:, None, None, None]
    w2 = jnp.transpose(w_full, (0, 2, 3, 1)).reshape(-1, 1)
    tp = jnp.sum(p2 * y2 * w2, axis=0)
    fn = jnp.sum((1.0 - p2) * y2 * w2, axis=0)
    fp = jnp.sum(p2 * (1.0 - y2) * w2, axis=0)
    dice = (2.0 * tp + 1e-10) / (2.0 * tp + fn + fp + 1e-10)
    return 1.0 - (dice * cls_w).sum() / cls_w.sum()


def _multi_scale_dice_loss_ref(predictions, soft_y, img_w, pix_w, cls_w, *,
                               softmax, scale_weights):
    loss = 0.0
    weight = 0.0
    for pred, sw in zip(predictions, scale_weights):
        oh, ow = pred.shape[2], pred.shape[3]
        sy = bilinear_resize_nchw(soft_y, oh, ow)
        pw = bilinear_resize_nchw(pix_w, oh, ow)
        loss = loss + _dice_loss_ref(pred, sy, img_w, pw, cls_w, softmax) * sw
        weight = weight + sw
    return loss / weight


# --------------------------------- main --------------------------------------

if __name__ == "__main__":
    key = jax.random.PRNGKey(0)
    k1, k2, k3, k4, k5, k6 = jax.random.split(key, 6)

    N, C, H, W = 2, 4, 16, 16

    # Multi-scale predictions (logits), NCHW.
    pred_full = jax.random.normal(k1, (N, C, H, W), dtype=jnp.float32)
    pred_half = jax.random.normal(k2, (N, C, H // 2, W // 2), dtype=jnp.float32)
    predictions = [pred_full, pred_half]

    # Soft ground truth (per-pixel class distribution), NCHW.
    soft_y = jax.nn.softmax(
        jax.random.normal(k3, (N, C, H, W), dtype=jnp.float32), axis=1)

    # Pixel weight (single channel), image weight, class weight.
    pix_w = jax.random.uniform(k4, (N, 1, H, W), dtype=jnp.float32,
                               minval=0.5, maxval=1.5)
    img_w = jax.random.uniform(k5, (N,), dtype=jnp.float32,
                               minval=0.5, maxval=1.5)
    cls_w = jax.random.uniform(k6, (C,), dtype=jnp.float32,
                               minval=0.5, maxval=1.5)

    # Deterministic module "parameter": MultiScaleDiceLoss_Scale_Weight.
    scale_weights = (1.0, 0.5)

    # JIT the whole multi-scale forward so resize + epilogue + pallas_calls
    # compile into one program.
    loss_fn = jax.jit(functools.partial(multi_scale_dice_loss,
                                        softmax=True,
                                        scale_weights=scale_weights))
    loss = jax.block_until_ready(loss_fn(predictions, soft_y, img_w, pix_w,
                                         cls_w))

    # Sanity-check against the pure-JAX reference (approx reciprocal in the
    # kernel softmax perturbs the result at ~1e-4 level).
    loss_ref = _multi_scale_dice_loss_ref(predictions, soft_y, img_w, pix_w,
                                          cls_w, softmax=True,
                                          scale_weights=scale_weights)
    assert loss.shape == () and bool(jnp.isfinite(loss))
    assert abs(float(loss) - float(loss_ref)) < 5e-3, (float(loss),
                                                       float(loss_ref))
    print("KERNEL_OK")
</pallas_src>

<mosaic_0001>
module attributes {stable_mosaic.version = 11 : i64} {
  func.func @_dice_stats_kernel(%arg0: i32, %arg1: i32, %arg2: memref<1x4x64xf32, #tpu.memory_space<vmem>>, %arg3: memref<1x4x64xf32, #tpu.memory_space<vmem>>, %arg4: memref<1x1x64xf32, #tpu.memory_space<vmem>>, %arg5: memref<1x4x1xf32, #tpu.memory_space<vmem>>, %arg6: memref<1x4x1xf32, #tpu.memory_space<vmem>>, %arg7: memref<1x4x1xf32, #tpu.memory_space<vmem>>) attributes {dimension_semantics = [#tpu.dimension_semantics<parallel>, #tpu.dimension_semantics<arbitrary>], iteration_bounds = array<i64: 2, 1>, scalar_prefetch = 0 : i64, scratch_operands = 0 : i64, tpu.core_type = #tpu.core_type<tc>, window_params = [{transform_indices = @transform_0, window_bounds = array<i64: 1, 4, 64>}, {transform_indices = @transform_1, window_bounds = array<i64: 1, 4, 64>}, {transform_indices = @transform_2, window_bounds = array<i64: 1, 1, 64>}, {transform_indices = @transform_3, window_bounds = array<i64: 1, 4, 1>}, {transform_indices = @transform_4, window_bounds = array<i64: 1, 4, 1>}, {transform_indices = @transform_5, window_bounds = array<i64: 1, 4, 1>}]} {
    %c0_i32 = arith.constant 0 : i32
    %0 = arith.cmpi eq, %arg1, %c0_i32 : i32
    %1 = arith.extui %0 : i1 to i32
    %c0_i32_0 = arith.constant 0 : i32
    %2 = arith.cmpi ne, %1, %c0_i32_0 : i32
    scf.if %2 {
      %cst_31 = arith.constant 0.000000e+00 : f32
      %48 = vector.broadcast %cst_31 : f32 to vector<1x4x1xf32>
      %c0_32 = arith.constant 0 : index
      %c0_33 = arith.constant 0 : index
      %c0_34 = arith.constant 0 : index
      %49 = vector.load %arg5[%c0_32, %c0_33, %c0_34] : memref<1x4x1xf32, #tpu.memory_space<vmem>>, vector<1x4x1xf32>
      tpu.vector_store %arg5[%c0_32, %c0_33, %c0_34], %48 {strides = array<i32>} : memref<1x4x1xf32, #tpu.memory_space<vmem>>, vector<1x4x1xf32>,
      %cst_35 = arith.constant 0.000000e+00 : f32
      %50 = vector.broadcast %cst_35 : f32 to vector<1x4x1xf32>
      %c0_36 = arith.constant 0 : index
      %c0_37 = arith.constant 0 : index
      %c0_38 = arith.constant 0 : index
      %51 = vector.load %arg6[%c0_36, %c0_37, %c0_38] : memref<1x4x1xf32, #tpu.memory_space<vmem>>, vector<1x4x1xf32>
      tpu.vector_store %arg6[%c0_36, %c0_37, %c0_38], %50 {strides = array<i32>} : memref<1x4x1xf32, #tpu.memory_space<vmem>>, vector<1x4x1xf32>,
      %cst_39 = arith.constant 0.000000e+00 : f32
      %52 = vector.broadcast %cst_39 : f32 to vector<1x4x1xf32>
      %c0_40 = arith.constant 0 : index
      %c0_41 = arith.constant 0 : index
      %c0_42 = arith.constant 0 : index
      %53 = vector.load %arg7[%c0_40, %c0_41, %c0_42] : memref<1x4x1xf32, #tpu.memory_space<vmem>>, vector<1x4x1xf32>
      tpu.vector_store %arg7[%c0_40, %c0_41, %c0_42], %52 {strides = array<i32>} : memref<1x4x1xf32, #tpu.memory_space<vmem>>, vector<1x4x1xf32>,
    } else {
    }
    %c0 = arith.constant 0 : index
    %c0_1 = arith.constant 0 : index
    %c0_2 = arith.constant 0 : index
    %3 = vector.load %arg2[%c0, %c0_1, %c0_2] : memref<1x4x64xf32, #tpu.memory_space<vmem>>, vector<1x4x64xf32>
    %4 = vector.shape_cast %3 : vector<1x4x64xf32> to vector<4x64xf32>
    %c0_3 = arith.constant 0 : index
    %c0_4 = arith.constant 0 : index
    %c0_5 = arith.constant 0 : index
    %5 = vector.load %arg3[%c0_3, %c0_4, %c0_5] : memref<1x4x64xf32, #tpu.memory_space<vmem>>, vector<1x4x64xf32>
    %6 = vector.shape_cast %5 : vector<1x4x64xf32> to vector<4x64xf32>
    %c0_6 = arith.constant 0 : index
    %c0_7 = arith.constant 0 : index
    %c0_8 = arith.constant 0 : index
    %7 = vector.load %arg4[%c0_6, %c0_7, %c0_8] : memref<1x1x64xf32, #tpu.memory_space<vmem>>, vector<1x1x64xf32>
    %8 = vector.shape_cast %7 : vector<1x1x64xf32> to vector<1x64xf32>
    %cst = arith.constant dense<0xFF800000> : vector<64xf32>
    %9 = vector.multi_reduction <maximumf>, %4, %cst [0] : vector<4x64xf32> to vector<64xf32>
    %10 = vector.shape_cast %9 : vector<64xf32> to vector<1x64xf32>
    %11 = vector.broadcast %10 : vector<1x64xf32> to vector<4x64xf32>
    %12 = arith.subf %4, %11 : vector<4x64xf32>
    %13 = math.exp %12 : vector<4x64xf32>
    %cst_9 = arith.constant dense<0.000000e+00> : vector<64xf32>
    %14 = vector.multi_reduction <add>, %13, %cst_9 [0] : vector<4x64xf32> to vector<64xf32>
    %15 = vector.shape_cast %14 : vector<64xf32> to vector<1x64xf32>
    %16 = tpu.reciprocal %15 {approx = true} : vector<1x64xf32> -> vector<1x64xf32>
    %17 = vector.broadcast %16 : vector<1x64xf32> to vector<4x64xf32>
    %18 = arith.mulf %13, %17 : vector<4x64xf32>
    %19 = vector.broadcast %8 : vector<1x64xf32> to vector<4x64xf32>
    %20 = arith.mulf %6, %19 : vector<4x64xf32>
    %21 = vector.broadcast %8 : vector<1x64xf32> to vector<4x64xf32>
    %22 = arith.mulf %18, %21 : vector<4x64xf32>
    %23 = arith.mulf %18, %20 : vector<4x64xf32>
    %c0_10 = arith.constant 0 : index
    %c0_11 = arith.constant 0 : index
    %c0_12 = arith.constant 0 : index
    %24 = vector.load %arg5[%c0_10, %c0_11, %c0_12] : memref<1x4x1xf32, #tpu.memory_space<vmem>>, vector<1x4x1xf32>
    %25 = vector.shape_cast %24 : vector<1x4x1xf32> to vector<4x1xf32>
    %cst_13 = arith.constant dense<0.000000e+00> : vector<4xf32>
    %26 = vector.multi_reduction <add>, %23, %cst_13 [1] : vector<4x64xf32> to vector<4xf32>
    %27 = vector.shape_cast %26 : vector<4xf32> to vector<4x1xf32>
    %28 = arith.addf %25, %27 : vector<4x1xf32>
    %c0_14 = arith.constant 0 : index
    %c0_15 = arith.constant 0 : index
    %c0_16 = arith.constant 0 : index
    %29 = vector.load %arg5[%c0_14, %c0_15, %c0_16] : memref<1x4x1xf32, #tpu.memory_space<vmem>>, vector<1x4x1xf32>
    %30 = vector.shape_cast %29 : vector<1x4x1xf32> to vector<4x1xf32>
    %31 = vector.shape_cast %28 : vector<4x1xf32> to vector<1x4x1xf32>
    tpu.vector_store %arg5[%c0_14, %c0_15, %c0_16], %31 {strides = array<i32>} : memref<1x4x1xf32, #tpu.memory_space<vmem>>, vector<1x4x1xf32>,
    %c0_17 = arith.constant 0 : index
    %c0_18 = arith.constant 0 : index
    %c0_19 = arith.constant 0 : index
    %32 = vector.load %arg6[%c0_17, %c0_18, %c0_19] : memref<1x4x1xf32, #tpu.memory_space<vmem>>, vector<1x4x1xf32>
    %33 = vector.shape_cast %32 : vector<1x4x1xf32> to vector<4x1xf32>
    %cst_20 = arith.constant dense<0.000000e+00> : vector<4xf32>
    %34 = vector.multi_reduction <add>, %20, %cst_20 [1] : vector<4x64xf32> to vector<4xf32>
    %35 = vector.shape_cast %34 : vector<4xf32> to vector<4x1xf32>
    %36 = arith.addf %33, %35 : vector<4x1xf32>
    %c0_21 = arith.constant 0 : index
    %c0_22 = arith.constant 0 : index
    %c0_23 = arith.constant 0 : index
    %37 = vector.load %arg6[%c0_21, %c0_22, %c0_23] : memref<1x4x1xf32, #tpu.memory_space<vmem>>, vector<1x4x1xf32>
    %38 = vector.shape_cast %37 : vector<1x4x1xf32> to vector<4x1xf32>
    %39 = vector.shape_cast %36 : vector<4x1xf32> to vector<1x4x1xf32>
    tpu.vector_store %arg6[%c0_21, %c0_22, %c0_23], %39 {strides = array<i32>} : memref<1x4x1xf32, #tpu.memory_space<vmem>>, vector<1x4x1xf32>,
    %c0_24 = arith.constant 0 : index
    %c0_25 = arith.constant 0 : index
    %c0_26 = arith.constant 0 : index
    %40 = vector.load %arg7[%c0_24, %c0_25, %c0_26] : memref<1x4x1xf32, #tpu.memory_space<vmem>>, vector<1x4x1xf32>
    %41 = vector.shape_cast %40 : vector<1x4x1xf32> to vector<4x1xf32>
    %cst_27 = arith.constant dense<0.000000e+00> : vector<4xf32>
    %42 = vector.multi_reduction <add>, %22, %cst_27 [1] : vector<4x64xf32> to vector<4xf32>
    %43 = vector.shape_cast %42 : vector<4xf32> to vector<4x1xf32>
    %44 = arith.addf %41, %43 : vector<4x1xf32>
    %c0_28 = arith.constant 0 : index
    %c0_29 = arith.constant 0 : index
    %c0_30 = arith.constant 0 : index
    %45 = vector.load %arg7[%c0_28, %c0_29, %c0_30] : memref<1x4x1xf32, #tpu.memory_space<vmem>>, vector<1x4x1xf32>
    %46 = vector.shape_cast %45 : vector<1x4x1xf32> to vector<4x1xf32>
    %47 = vector.shape_cast %44 : vector<4x1xf32> to vector<1x4x1xf32>
    tpu.vector_store %arg7[%c0_28, %c0_29, %c0_30], %47 {strides = array<i32>} : memref<1x4x1xf32, #tpu.memory_space<vmem>>, vector<1x4x1xf32>,
    return
  }
  func.func @transform_0(%arg0: i32, %arg1: i32) -> (i32, i32, i32) {
    %c0_i32 = arith.constant 0 : i32
    %c0_i32_0 = arith.constant 0 : i32
    return %arg0, %c0_i32, %arg1 : i32, i32, i32
  }
  func.func @transform_1(%arg0: i32, %arg1: i32) -> (i32, i32, i32) {
    %c0_i32 = arith.constant 0 : i32
    %c0_i32_0 = arith.constant 0 : i32
    return %arg0, %c0_i32, %arg1 : i32, i32, i32
  }
  func.func @transform_2(%arg0: i32, %arg1: i32) -> (i32, i32, i32) {
    %c0_i32 = arith.constant 0 : i32
    %c0_i32_0 = arith.constant 0 : i32
    return %arg0, %c0_i32, %arg1 : i32, i32, i32
  }
  func.func @transform_3(%arg0: i32, %arg1: i32) -> (i32, i32, i32) {
    %c0_i32 = arith.constant 0 : i32
    %c0_i32_0 = arith.constant 0 : i32
    %c0_i32_1 = arith.constant 0 : i32
    return %arg0, %c0_i32, %c0_i32_0 : i32, i32, i32
  }
  func.func @transform_4(%arg0: i32, %arg1: i32) -> (i32, i32, i32) {
    %c0_i32 = arith.constant 0 : i32
    %c0_i32_0 = arith.constant 0 : i32
    %c0_i32_1 = arith.constant 0 : i32
    return %arg0, %c0_i32, %c0_i32_0 : i32, i32, i32
  }
  func.func @transform_5(%arg0: i32, %arg1: i32) -> (i32, i32, i32) {
    %c0_i32 = arith.constant 0 : i32
    %c0_i32_0 = arith.constant 0 : i32
    %c0_i32_1 = arith.constant 0 : i32
    return %arg0, %c0_i32, %c0_i32_0 : i32, i32, i32
  }
}

module attributes {stable_mosaic.version = 11 : i64} {
  func.func @_dice_stats_kernel(%arg0: i32, %arg1: i32, %arg2: memref<1x4x256xf32, #tpu.memory_space<vmem>>, %arg3: memref<1x4x256xf32, #tpu.memory_space<vmem>>, %arg4: memref<1x1x256xf32, #tpu.memory_space<vmem>>, %arg5: memref<1x4x1xf32, #tpu.memory_space<vmem>>, %arg6: memref<1x4x1xf32, #tpu.memory_space<vmem>>, %arg7: memref<1x4x1xf32, #tpu.memory_space<vmem>>) attributes {dimension_semantics = [#tpu.dimension_semantics<parallel>, #tpu.dimension_semantics<arbitrary>], iteration_bounds = array<i64: 2, 1>, scalar_prefetch = 0 : i64, scratch_operands = 0 : i64, tpu.core_type = #tpu.core_type<tc>, window_params = [{transform_indices = @transform_0, window_bounds = array<i64: 1, 4, 256>}, {transform_indices = @transform_1, window_bounds = array<i64: 1, 4, 256>}, {transform_indices = @transform_2, window_bounds = array<i64: 1, 1, 256>}, {transform_indices = @transform_3, window_bounds = array<i64: 1, 4, 1>}, {transform_indices = @transform_4, window_bounds = array<i64: 1, 4, 1>}, {transform_indices = @transform_5, window_bounds = array<i64: 1, 4, 1>}]} {
    %c0_i32 = arith.constant 0 : i32
    %0 = arith.cmpi eq, %arg1, %c0_i32 : i32
    %1 = arith.extui %0 : i1 to i32
    %c0_i32_0 = arith.constant 0 : i32
    %2 = arith.cmpi ne, %1, %c0_i32_0 : i32
    scf.if %2 {
      %cst_31 = arith.constant 0.000000e+00 : f32
      %48 = vector.broadcast %cst_31 : f32 to vector<1x4x1xf32>
      %c0_32 = arith.constant 0 : index
      %c0_33 = arith.constant 0 : index
      %c0_34 = arith.constant 0 : index
      %49 = vector.load %arg5[%c0_32, %c0_33, %c0_34] : memref<1x4x1xf32, #tpu.memory_space<vmem>>, vector<1x4x1xf32>
      tpu.vector_store %arg5[%c0_32, %c0_33, %c0_34], %48 {strides = array<i32>} : memref<1x4x1xf32, #tpu.memory_space<vmem>>, vector<1x4x1xf32>,
      %cst_35 = arith.constant 0.000000e+00 : f32
      %50 = vector.broadcast %cst_35 : f32 to vector<1x4x1xf32>
      %c0_36 = arith.constant 0 : index
      %c0_37 = arith.constant 0 : index
      %c0_38 = arith.constant 0 : index
      %51 = vector.load %arg6[%c0_36, %c0_37, %c0_38] : memref<1x4x1xf32, #tpu.memory_space<vmem>>, vector<1x4x1xf32>
      tpu.vector_store %arg6[%c0_36, %c0_37, %c0_38], %50 {strides = array<i32>} : memref<1x4x1xf32, #tpu.memory_space<vmem>>, vector<1x4x1xf32>,
      %cst_39 = arith.constant 0.000000e+00 : f32
      %52 = vector.broadcast %cst_39 : f32 to vector<1x4x1xf32>
      %c0_40 = arith.constant 0 : index
      %c0_41 = arith.constant 0 : index
      %c0_42 = arith.constant 0 : index
      %53 = vector.load %arg7[%c0_40, %c0_41, %c0_42] : memref<1x4x1xf32, #tpu.memory_space<vmem>>, vector<1x4x1xf32>
      tpu.vector_store %arg7[%c0_40, %c0_41, %c0_42], %52 {strides = array<i32>} : memref<1x4x1xf32, #tpu.memory_space<vmem>>, vector<1x4x1xf32>,
    } else {
    }
    %c0 = arith.constant 0 : index
    %c0_1 = arith.constant 0 : index
    %c0_2 = arith.constant 0 : index
    %3 = vector.load %arg2[%c0, %c0_1, %c0_2] : memref<1x4x256xf32, #tpu.memory_space<vmem>>, vector<1x4x256xf32>
    %4 = vector.shape_cast %3 : vector<1x4x256xf32> to vector<4x256xf32>
    %c0_3 = arith.constant 0 : index
    %c0_4 = arith.constant 0 : index
    %c0_5 = arith.constant 0 : index
    %5 = vector.load %arg3[%c0_3, %c0_4, %c0_5] : memref<1x4x256xf32, #tpu.memory_space<vmem>>, vector<1x4x256xf32>
    %6 = vector.shape_cast %5 : vector<1x4x256xf32> to vector<4x256xf32>
    %c0_6 = arith.constant 0 : index
    %c0_7 = arith.constant 0 : index
    %c0_8 = arith.constant 0 : index
    %7 = vector.load %arg4[%c0_6, %c0_7, %c0_8] : memref<1x1x256xf32, #tpu.memory_space<vmem>>, vector<1x1x256xf32>
    %8 = vector.shape_cast %7 : vector<1x1x256xf32> to vector<1x256xf32>
    %cst = arith.constant dense<0xFF800000> : vector<256xf32>
    %9 = vector.multi_reduction <maximumf>, %4, %cst [0] : vector<4x256xf32> to vector<256xf32>
    %10 = vector.shape_cast %9 : vector<256xf32> to vector<1x256xf32>
    %11 = vector.broadcast %10 : vector<1x256xf32> to vector<4x256xf32>
    %12 = arith.subf %4, %11 : vector<4x256xf32>
    %13 = math.exp %12 : vector<4x256xf32>
    %cst_9 = arith.constant dense<0.000000e+00> : vector<256xf32>
    %14 = vector.multi_reduction <add>, %13, %cst_9 [0] : vector<4x256xf32> to vector<256xf32>
    %15 = vector.shape_cast %14 : vector<256xf32> to vector<1x256xf32>
    %16 = tpu.reciprocal %15 {approx = true} : vector<1x256xf32> -> vector<1x256xf32>
    %17 = vector.broadcast %16 : vector<1x256xf32> to vector<4x256xf32>
    %18 = arith.mulf %13, %17 : vector<4x256xf32>
    %19 = vector.broadcast %8 : vector<1x256xf32> to vector<4x256xf32>
    %20 = arith.mulf %6, %19 : vector<4x256xf32>
    %21 = vector.broadcast %8 : vector<1x256xf32> to vector<4x256xf32>
    %22 = arith.mulf %18, %21 : vector<4x256xf32>
    %23 = arith.mulf %18, %20 : vector<4x256xf32>
    %c0_10 = arith.constant 0 : index
    %c0_11 = arith.constant 0 : index
    %c0_12 = arith.constant 0 : index
    %24 = vector.load %arg5[%c0_10, %c0_11, %c0_12] : memref<1x4x1xf32, #tpu.memory_space<vmem>>, vector<1x4x1xf32>
    %25 = vector.shape_cast %24 : vector<1x4x1xf32> to vector<4x1xf32>
    %cst_13 = arith.constant dense<0.000000e+00> : vector<4xf32>
    %26 = vector.multi_reduction <add>, %23, %cst_13 [1] : vector<4x256xf32> to vector<4xf32>
    %27 = vector.shape_cast %26 : vector<4xf32> to vector<4x1xf32>
    %28 = arith.addf %25, %27 : vector<4x1xf32>
    %c0_14 = arith.constant 0 : index
    %c0_15 = arith.constant 0 : index
    %c0_16 = arith.constant 0 : index
    %29 = vector.load %arg5[%c0_14, %c0_15, %c0_16] : memref<1x4x1xf32, #tpu.memory_space<vmem>>, vector<1x4x1xf32>
    %30 = vector.shape_cast %29 : vector<1x4x1xf32> to vector<4x1xf32>
    %31 = vector.shape_cast %28 : vector<4x1xf32> to vector<1x4x1xf32>
    tpu.vector_store %arg5[%c0_14, %c0_15, %c0_16], %31 {strides = array<i32>} : memref<1x4x1xf32, #tpu.memory_space<vmem>>, vector<1x4x1xf32>,
    %c0_17 = arith.constant 0 : index
    %c0_18 = arith.constant 0 : index
    %c0_19 = arith.constant 0 : index
    %32 = vector.load %arg6[%c0_17, %c0_18, %c0_19] : memref<1x4x1xf32, #tpu.memory_space<vmem>>, vector<1x4x1xf32>
    %33 = vector.shape_cast %32 : vector<1x4x1xf32> to vector<4x1xf32>
    %cst_20 = arith.constant dense<0.000000e+00> : vector<4xf32>
    %34 = vector.multi_reduction <add>, %20, %cst_20 [1] : vector<4x256xf32> to vector<4xf32>
    %35 = vector.shape_cast %34 : vector<4xf32> to vector<4x1xf32>
    %36 = arith.addf %33, %35 : vector<4x1xf32>
    %c0_21 = arith.constant 0 : index
    %c0_22 = arith.constant 0 : index
    %c0_23 = arith.constant 0 : index
    %37 = vector.load %arg6[%c0_21, %c0_22, %c0_23] : memref<1x4x1xf32, #tpu.memory_space<vmem>>, vector<1x4x1xf32>
    %38 = vector.shape_cast %37 : vector<1x4x1xf32> to vector<4x1xf32>
    %39 = vector.shape_cast %36 : vector<4x1xf32> to vector<1x4x1xf32>
    tpu.vector_store %arg6[%c0_21, %c0_22, %c0_23], %39 {strides = array<i32>} : memref<1x4x1xf32, #tpu.memory_space<vmem>>, vector<1x4x1xf32>,
    %c0_24 = arith.constant 0 : index
    %c0_25 = arith.constant 0 : index
    %c0_26 = arith.constant 0 : index
    %40 = vector.load %arg7[%c0_24, %c0_25, %c0_26] : memref<1x4x1xf32, #tpu.memory_space<vmem>>, vector<1x4x1xf32>
    %41 = vector.shape_cast %40 : vector<1x4x1xf32> to vector<4x1xf32>
    %cst_27 = arith.constant dense<0.000000e+00> : vector<4xf32>
    %42 = vector.multi_reduction <add>, %22, %cst_27 [1] : vector<4x256xf32> to vector<4xf32>
    %43 = vector.shape_cast %42 : vector<4xf32> to vector<4x1xf32>
    %44 = arith.addf %41, %43 : vector<4x1xf32>
    %c0_28 = arith.constant 0 : index
    %c0_29 = arith.constant 0 : index
    %c0_30 = arith.constant 0 : index
    %45 = vector.load %arg7[%c0_28, %c0_29, %c0_30] : memref<1x4x1xf32, #tpu.memory_space<vmem>>, vector<1x4x1xf32>
    %46 = vector.shape_cast %45 : vector<1x4x1xf32> to vector<4x1xf32>
    %47 = vector.shape_cast %44 : vector<4x1xf32> to vector<1x4x1xf32>
    tpu.vector_store %arg7[%c0_28, %c0_29, %c0_30], %47 {strides = array<i32>} : memref<1x4x1xf32, #tpu.memory_space<vmem>>, vector<1x4x1xf32>,
    return
  }
  func.func @transform_0(%arg0: i32, %arg1: i32) -> (i32, i32, i32) {
    %c0_i32 = arith.constant 0 : i32
    %c0_i32_0 = arith.constant 0 : i32
    return %arg0, %c0_i32, %arg1 : i32, i32, i32
  }
  func.func @transform_1(%arg0: i32, %arg1: i32) -> (i32, i32, i32) {
    %c0_i32 = arith.constant 0 : i32
    %c0_i32_0 = arith.constant 0 : i32
    return %arg0, %c0_i32, %arg1 : i32, i32, i32
  }
  func.func @transform_2(%arg0: i32, %arg1: i32) -> (i32, i32, i32) {
    %c0_i32 = arith.constant 0 : i32
    %c0_i32_0 = arith.constant 0 : i32
    return %arg0, %c0_i32, %arg1 : i32, i32, i32
  }
  func.func @transform_3(%arg0: i32, %arg1: i32) -> (i32, i32, i32) {
    %c0_i32 = arith.constant 0 : i32
    %c0_i32_0 = arith.constant 0 : i32
    %c0_i32_1 = arith.constant 0 : i32
    return %arg0, %c0_i32, %c0_i32_0 : i32, i32, i32
  }
  func.func @transform_4(%arg0: i32, %arg1: i32) -> (i32, i32, i32) {
    %c0_i32 = arith.constant 0 : i32
    %c0_i32_0 = arith.constant 0 : i32
    %c0_i32_1 = arith.constant 0 : i32
    return %arg0, %c0_i32, %c0_i32_0 : i32, i32, i32
  }
  func.func @transform_5(%arg0: i32, %arg1: i32) -> (i32, i32, i32) {
    %c0_i32 = arith.constant 0 : i32
    %c0_i32_0 = arith.constant 0 : i32
    %c0_i32_1 = arith.constant 0 : i32
    return %arg0, %c0_i32, %c0_i32_0 : i32, i32, i32
  }
}

</mosaic_0001>

<bundles_post_ra>
// kernel: multi_scale_dice_loss.2
= control target key start
LH: loop header
LB: loop body
LE: loop exit
PB: predicated region body
PF: predicated region fallthrough
CT: control target
= control target key end

     0   :  { %s715_s18 = smov 0   ;;  %s717_s19 = smov 0   ;;  %s798_s0 = inlined_call_operand.vmem [shape: f32[2,4,256], index: 0, kind: input, shape index: {}]   ;;  %s799_s1 = inlined_call_operand.vmem [shape: f32[2,4,256], index: 1, kind: input, shape index: {}]   ;;  %s800_s2 = inlined_call_operand.vmem [shape: f32[2,1,256], index: 2, kind: input, shape index: {}]   ;;  %s801_s3 = inlined_call_operand.vmem [shape: f32[2,4,1], index: 3, kind: output, shape index: {0}]   ;;  %s802_s4 = inlined_call_operand.vmem [shape: f32[2,4,1], index: 4, kind: output, shape index: {1}]   ;;  %s803_s5 = inlined_call_operand.vmem [shape: f32[2,4,1], index: 5, kind: output, shape index: {2}]  }
   0x1   :  { %s719_s20 = smov 0  }
   0x2 LB: > { %s28_s21 = sadd.s32 1, %s678_s19  ;;  %p615_p0 = scmp.ge.s32.totalorder %s682_s20, 1  ;;  %s682_s20 = sphi %s719_s20, %s16_s20   ;;  %s678_s19 = sphi %s717_s19, %s805_s19   ;;  %s674_s18 = sphi %s715_s18, %s804_s18  }
   0x3   : > { %p30_p1 = scmp.ge.s32.totalorder %s28_s21, 2  ;;  %p244_p2 = scmp.lt.s32.totalorder %s682_s20, 3 }
   0x5   : > { %s807_s21 = smov (%p30_p1, %s28_s21), 0  ;;  %p245_p3 = pnand %p615_p0, %p244_p2 }
   0x6   : > { %p301_p4 = scmp.lt.s32.totalorder (!%p245_p3), %s674_s18, 1  ;;  %vm355_vm0 = vcmask (!%p245_p3), 1043456   ;;  %vm345_vm1 = vcmask (!%p245_p3), 3072   ;;  %v684_v4 = vmov (!%p245_p3), 0.0   ;;  %v402_v29 = vlaneseq (!%p245_p3) }
   0x7   : > { %248 = sbr.rel (%p245_p3) target bundleno = 236 (0xec), region = 32 }
   0x8   : > { %v403_v34 = vshrl.u32 (!%p245_p3), %v402_v29, 7 }
   0xa   : > { %v404_v38 = vsub.s32 (!%p245_p3), 0, %v403_v34  ;;  %v408_v39 = vsub.s32 (!%p245_p3), 1, %v403_v34 }
   0xe   : > { %s809_s18 = smov (!%p301_p4, %s674_s18), 1 }
   0xf   : > { %s626_s22 = sshll.u32 %s809_s18, 3  ;;  %s742_s26 = sshll.u32 %s809_s18, 2 }
  0x10   : > { %s308_s25 = scalar_lea.vmem %s798_s0, %s626_s22  ;;  %s749_s29 = scalar_lea.vmem %s801_s3, %s742_s26 }
  0x11   : > { %v349_v0 = vld [vmem:[%s308_s25] sm:$0xff]  ;;  %346 = vst.msk [vmem:[%s749_s29] sm:$0xf] %vm345_vm1, %v684_v4  ;;  %s620_s30 = sshll.u32 %s809_s18, 1  ;;  %s318_s11 = scalar_lea.vmem %s799_s1, %s626_s22 }
  0x12   : > { %v353_v1 = vcombine.high %v349_v0, %v349_v0  ;;  %v356_v2 = vsel %vm355_vm0, %v349_v0, -inf  ;;  %s327_s8 = scalar_lea.vmem %s800_s2, %s620_s30  ;;  %v350_v45 = vld [vmem:[%s318_s11] sm:$0xff]  ;;  %s336_s14 = scalar_lea.vmem %s802_s4, %s742_s26 }
  0x13   : > { %v357_v3 = vrot.slane %v356_v2, 4  ;;  %v351_v40 = vld [vmem:[%s327_s8] sm:$0x3]  ;;  %s340_s17 = scalar_lea.vmem %s803_s5, %s742_s26  ;;  %347 = vst.msk [vmem:[%s336_s14] sm:$0xf] %vm345_vm1, %v684_v4 }
  0x14   : > { %v363_v5 = vsel %vm355_vm0, %v353_v1, -inf  ;;  %v405_v41 = vrot.slane %v351_v40, %v404_v38  ;;  %v409_v42 = vrot.slane %v351_v40, %v408_v39  ;;  %348 = vst.msk [vmem:[%s340_s17] sm:$0xf] %vm345_vm1, %v684_v4 }
  0x15   : > { %v358_v6 = vmax.f32 %v356_v2, %v357_v3  ;;  %v364_v7 = vrot.slane %v363_v5, 4 }
  0x16   : > { %v410_v43 = vcombine.low %v405_v41, %v409_v42 }
  0x17   : > { %v359_v8 = vrot.slane %v358_v6, 2  ;;  %v365_v9 = vmax.f32 %v363_v5, %v364_v7 }
  0x18   : > { %v412_v48 = vmul.f32 %v410_v43, %v350_v45 }
  0x19   : > { %v360_v10 = vmax.f32 %v358_v6, %v359_v8  ;;  %v366_v11 = vrot.slane %v365_v9, 2 }
  0x1a   : > { %v429_v51 = vcombine.high %v412_v48, %v412_v48  ;;  %v431_v58 = vsel %vm355_vm0, %v412_v48, 0.0  ;;  %v427_v7 = vld [vmem:[%s336_s14] sm:$0xf] }
  0x1b   : > { %v361_v12 = vrot.slane %v360_v10, 1  ;;  %v367_v13 = vmax.f32 %v365_v9, %v366_v11  ;;  %v438_v1 = vld [vmem:[%s340_s17] sm:$0xf] }
  0x1c   : > { %v432_v59 = vsel %vm355_vm0, %v429_v51, 0.0 }
  0x1d   : > { %v362_v14 = vmax.f32 %v360_v10, %v361_v12  ;;  %v368_v15 = vrot.slane %v367_v13, 1  ;;  %v433_v63 = vadd.f32 %v432_v59, %v431_v58 }
  0x1f   : > { %v369_v16 = vmax.f32 %v367_v13, %v368_v15 }
  0x21   : > { %v372_v17 = vcombine.low %v362_v14, %v369_v16 }
  0x23   : > { %v374_v18 = vsub.f32 %v349_v0, %v372_v17  ;;  %v415_v0 = vld [vmem:[%s749_s29] sm:$0xf] }
  0x25   : > { %v375_v19 = vmul.f32 1.442695, %v374_v18 }
  0x27   : > { %654 = vpow2.f32 %v375_v19 }
  0x31   : > { %v655_v20 = vpop.eup %654 }
  0x32   : > { %v378_v21 = vcombine.high %v655_v20, %v655_v20  ;;  %v380_v22 = vsel %vm355_vm0, %v655_v20, 0.0 }
  0x33   : > { %v381_v23 = vrot.slane %v380_v22, 4 }
  0x34   : > { %v387_v24 = vsel %vm355_vm0, %v378_v21, 0.0 }
  0x35   : > { %v382_v25 = vadd.f32 %v381_v23, %v380_v22  ;;  %v388_v26 = vrot.slane %v387_v24, 4 }
  0x37   : > { %v383_v27 = vrot.slane %v382_v25, 2  ;;  %v389_v28 = vadd.f32 %v388_v26, %v387_v24 }
  0x39   : > { %v384_v30 = vadd.f32 %v383_v27, %v382_v25  ;;  %v390_v31 = vrot.slane %v389_v28, 2 }
  0x3b   : > { %v385_v32 = vrot.slane %v384_v30, 1  ;;  %v391_v33 = vadd.f32 %v390_v31, %v389_v28 }
  0x3d   : > { %v386_v35 = vadd.f32 %v385_v32, %v384_v30  ;;  %v392_v36 = vrot.slane %v391_v33, 1 }
  0x3f   : > { %v393_v37 = vadd.f32 %v392_v36, %v391_v33  ;;  %656 = vrcp.f32 %v386_v35 }
  0x41   : > { %658 = vrcp.f32 %v393_v37 }
  0x49   : > { %v657_v44 = vpop.eup %656 }
  0x4b   : > { %v659_v46 = vpop.eup %658 }
  0x4c   : > { %v398_v47 = vcombine.low %v657_v44, %v659_v46 }
  0x4e   : > { %v400_v49 = vmul.f32 %v655_v20, %v398_v47 }
  0x50   : > { %v414_v50 = vmul.f32 %v412_v48, %v400_v49  ;;  %v413_v52 = vmul.f32 %v410_v43, %v400_v49 }
  0x52   : > { %v417_v53 = vcombine.high %v414_v50, %v414_v50  ;;  %v419_v54 = vsel %vm355_vm0, %v414_v50, 0.0  ;;  %v440_v55 = vcombine.high %v413_v52, %v413_v52  ;;  %v442_v56 = vsel %vm355_vm0, %v413_v52, 0.0 }
  0x54   : > { %v420_v57 = vsel %vm355_vm0, %v417_v53, 0.0  ;;  %v443_v60 = vsel %vm355_vm0, %v440_v55, 0.0 }
  0x55   : > { %v421_v61 = vadd.f32 %v420_v57, %v419_v54  ;;  %v444_v62 = vadd.f32 %v443_v60, %v442_v56 }
  0x57   : > { %422 = vadd.xlane.f32.xlu0 %v421_v61  ;;  %445 = vadd.xlane.f32.xlu1 %v444_v62 }
  0x5b   : > { %434 = vadd.xlane.f32.xlu0 %v433_v63 }
  0xe4   : > { %v423_v2 = vpop.xlane.xlu0 %422  ;;  %v446_v3 = vpop.xlane.xlu1 %445 }
  0xe5   : > { %v424_v5 = vadd.f32 %v423_v2, %v415_v0  ;;  %v447_v6 = vadd.f32 %v446_v3, %v438_v1 }
  0xe7   : > { %426 = vst.msk [vmem:[%s749_s29] sm:$0xf] %vm345_vm1, %v424_v5  ;;  %448 = vst.msk [vmem:[%s340_s17] sm:$0xf] %vm345_vm1, %v447_v6 }
  0xe8   : > { %v435_v8 = vpop.xlane.xlu0 %434 }
  0xe9   : > { %v436_v9 = vadd.f32 %v435_v8, %v427_v7 }
  0xeb   : > { %437 = vst.msk [vmem:[%s336_s14] sm:$0xf] %vm345_vm1, %v436_v9 }
  0xec PF: > { %s16_s20 = sadd.s32 1, %s682_s20   ;;  %s804_s18 = smov %s678_s19 }
  0xed   : > { %p13_p5 = scmp.ge.s32.totalorder %s16_s20, 4   ;;  %s805_s19 = smov %s807_s21 }
  0xef   :  { %15 = sbr.rel (!%p13_p5) target bundleno = 2 (0x2), region = 96 }

// kernel: multi_scale_dice_loss.3
= control target key start
LH: loop header
LB: loop body
LE: loop exit
PB: predicated region body
PF: predicated region fallthrough
CT: control target
= control target key end

     0   :  { %s626_s18 = smov 0   ;;  %s628_s19 = smov 0   ;;  %s698_s0 = inlined_call_operand.vmem [shape: f32[2,4,64], index: 0, kind: input, shape index: {}]   ;;  %s699_s1 = inlined_call_operand.vmem [shape: f32[2,4,64], index: 1, kind: input, shape index: {}]   ;;  %s700_s2 = inlined_call_operand.vmem [shape: f32[2,1,64], index: 2, kind: input, shape index: {}]   ;;  %s701_s3 = inlined_call_operand.vmem [shape: f32[2,4,1], index: 3, kind: output, shape index: {0}]   ;;  %s702_s4 = inlined_call_operand.vmem [shape: f32[2,4,1], index: 4, kind: output, shape index: {1}]   ;;  %s703_s5 = inlined_call_operand.vmem [shape: f32[2,4,1], index: 5, kind: output, shape index: {2}]  }
   0x1   :  { %s630_s20 = smov 0  }
   0x2 LB: > { %s28_s21 = sadd.s32 1, %s589_s19  ;;  %p533_p0 = scmp.ge.s32.totalorder %s593_s20, 1  ;;  %s593_s20 = sphi %s630_s20, %s16_s20   ;;  %s589_s19 = sphi %s628_s19, %s705_s19   ;;  %s585_s18 = sphi %s626_s18, %s704_s18  }
   0x3   : > { %p30_p1 = scmp.ge.s32.totalorder %s28_s21, 2  ;;  %p235_p2 = scmp.lt.s32.totalorder %s593_s20, 3 }
   0x5   : > { %s707_s21 = smov (%p30_p1, %s28_s21), 0  ;;  %p236_p3 = pnand %p533_p0, %p235_p2 }
   0x6   : > { %p285_p4 = scmp.lt.s32.totalorder (!%p236_p3), %s585_s18, 1  ;;  %vm328_vm0 = vcmask (!%p236_p3), 519168   ;;  %vm321_vm1 = vcmask (!%p236_p3), 3072   ;;  %v595_v2 = vmov (!%p236_p3), 0.0  }
   0x7   : > { %239 = sbr.rel (%p236_p3) target bundleno = 224 (0xe0), region = 32 }
   0xe   : > { %s709_s18 = smov (!%p285_p4, %s585_s18), 1 }
   0xf   : > { %s647_s22 = sshll.u32 %s709_s18, 2  ;;  %s304_s9 = scalar_lea.vmem %s700_s2, %s709_s18 }
  0x10   : > { %s291_s25 = scalar_lea.vmem %s698_s0, %s647_s22  ;;  %s657_s28 = scalar_lea.vmem %s701_s3, %s647_s22  ;;  %v539_v20 = vld [vmem:[%s304_s9] ss:$0 sm:$0xff] }
  0x11   : > { %v325_v0 = vld [vmem:[%s291_s25] sm:$0xf]  ;;  %322 = vst.msk [vmem:[%s657_s28] sm:$0xf] %vm321_vm1, %v595_v2  ;;  %s298_s6 = scalar_lea.vmem %s699_s1, %s647_s22  ;;  %s312_s12 = scalar_lea.vmem %s702_s4, %s647_s22 }
  0x12   : > { %v329_v1 = vsel %vm328_vm0, %v325_v0, -inf  ;;  %v326_v19 = vld [vmem:[%s298_s6] sm:$0xf]  ;;  %s316_s15 = scalar_lea.vmem %s703_s5, %s647_s22  ;;  %323 = vst.msk [vmem:[%s312_s12] sm:$0xf] %vm321_vm1, %v595_v2 }
  0x13   : > { %v330_v3 = vrot.slane %v329_v1, 4  ;;  %v354_v21 = vmul.f32 %v539_v20, %v326_v19  ;;  %324 = vst.msk [vmem:[%s316_s15] sm:$0xf] %vm321_vm1, %v595_v2 }
  0x15   : > { %v331_v4 = vmax.f32 %v329_v1, %v330_v3  ;;  %v365_v28 = vsel %vm328_vm0, %v354_v21, 0.0 }
  0x17   : > { %v332_v5 = vrot.slane %v331_v4, 2 }
  0x18   : > { %v357_v29 = vld [vmem:[%s657_s28] sm:$0xf] }
  0x19   : > { %v333_v6 = vmax.f32 %v331_v4, %v332_v5  ;;  %v364_v35 = vld [vmem:[%s312_s12] sm:$0xf] }
  0x1a   : > { %v370_v30 = vld [vmem:[%s316_s15] sm:$0xf] }
  0x1b   : > { %v334_v7 = vrot.slane %v333_v6, 1 }
  0x1d   : > { %v335_v8 = vmax.f32 %v333_v6, %v334_v7 }
  0x1f   : > { %v336_v9 = vsub.f32 %v325_v0, %v335_v8 }
  0x21   : > { %v337_v10 = vmul.f32 1.442695, %v336_v9 }
  0x23   : > { %567 = vpow2.f32 %v337_v10 }
  0x2d   : > { %v568_v11 = vpop.eup %567 }
  0x2e   : > { %v339_v12 = vsel %vm328_vm0, %v568_v11, 0.0 }
  0x2f   : > { %v340_v13 = vrot.slane %v339_v12, 4 }
  0x31   : > { %v341_v14 = vadd.f32 %v340_v13, %v339_v12 }
  0x33   : > { %v342_v15 = vrot.slane %v341_v14, 2 }
  0x35   : > { %v343_v16 = vadd.f32 %v342_v15, %v341_v14 }
  0x37   : > { %v344_v17 = vrot.slane %v343_v16, 1 }
  0x39   : > { %v345_v18 = vadd.f32 %v344_v17, %v343_v16 }
  0x3b   : > { %569 = vrcp.f32 %v345_v18 }
  0x45   : > { %v570_v22 = vpop.eup %569 }
  0x46   : > { %v347_v23 = vmul.f32 %v570_v22, %v568_v11 }
  0x48   : > { %v356_v24 = vmul.f32 %v354_v21, %v347_v23  ;;  %v355_v25 = vmul.f32 %v539_v20, %v347_v23 }
  0x4a   : > { %v358_v26 = vsel %vm328_vm0, %v356_v24, 0.0  ;;  %v371_v27 = vsel %vm328_vm0, %v355_v25, 0.0 }
  0x4b   : > { %359 = vadd.xlane.f32.xlu0 %v358_v26  ;;  %372 = vadd.xlane.f32.xlu1 %v371_v27 }
  0x4f   : > { %366 = vadd.xlane.f32.xlu0 %v365_v28 }
  0xd8   : > { %v360_v31 = vpop.xlane.xlu0 %359  ;;  %v373_v32 = vpop.xlane.xlu1 %372 }
  0xd9   : > { %v361_v33 = vadd.f32 %v360_v31, %v357_v29  ;;  %v374_v34 = vadd.f32 %v373_v32, %v370_v30 }
  0xdb   : > { %363 = vst.msk [vmem:[%s657_s28] sm:$0xf] %vm321_vm1, %v361_v33  ;;  %375 = vst.msk [vmem:[%s316_s15] sm:$0xf] %vm321_vm1, %v374_v34 }
  0xdc   : > { %v367_v36 = vpop.xlane.xlu0 %366 }
  0xdd   : > { %v368_v37 = vadd.f32 %v367_v36, %v364_v35 }
  0xdf   : > { %369 = vst.msk [vmem:[%s312_s12] sm:$0xf] %vm321_vm1, %v368_v37 }
  0xe0 PF: > { %s16_s20 = sadd.s32 1, %s593_s20   ;;  %s704_s18 = smov %s589_s19 }
  0xe1   : > { %p13_p5 = scmp.ge.s32.totalorder %s16_s20, 4   ;;  %s705_s19 = smov %s707_s21 }
  0xe3   :  { %15 = sbr.rel (!%p13_p5) target bundleno = 2 (0x2), region = 96 }

</bundles_post_ra>
